<compile_context>
chip_gen: v6e
topology: v6e:2x2x1
jax: 0.10.0
libtpu: 0.0.40
codegen_flags: <defaults>
</compile_context>

<pallas_src>
import functools

import numpy as np
import jax
import jax.numpy as jnp
from jax.experimental import pallas as pl
from jax.experimental.pallas import tpu as pltpu

THRESH = 0.5   # `thresh` in the PyTorch source
DECAY = 0.2    # `decay` in the PyTorch source


# ------------------------------- kernels ------------------------------------

def _snn_pool_first_kernel(x_ref, p_ref, spike_ref, mem_out_ref, acc_ref):
    """is_first path: mem starts at zero, so mem_new == pooled."""
    k = pl.program_id(1)

    @pl.when(k == 0)
    def _():
        acc_ref[...] = jnp.zeros_like(acc_ref)

    # Pooling = matmul against the constant pooling-weight matrix (idle MXU).
    acc_ref[...] += jnp.dot(x_ref[...], p_ref[...],
                            preferred_element_type=jnp.float32)

    @pl.when(k == pl.num_programs(1) - 1)
    def _():
        mem_new = acc_ref[...]
        fired = mem_new > THRESH
        spike_ref[...] = jnp.where(fired, 1.0, 0.0).astype(spike_ref.dtype)
        mem_out_ref[...] = jnp.where(fired, 0.0, mem_new * DECAY).astype(
            mem_out_ref.dtype)


def _snn_pool_kernel(x_ref, mem_ref, p_ref, spike_ref, mem_out_ref, acc_ref):
    k = pl.program_id(1)

    @pl.when(k == 0)
    def _():
        acc_ref[...] = jnp.zeros_like(acc_ref)

    acc_ref[...] += jnp.dot(x_ref[...], p_ref[...],
                            preferred_element_type=jnp.float32)

    @pl.when(k == pl.num_programs(1) - 1)
    def _():
        mem_new = mem_ref[...] + acc_ref[...]
        fired = mem_new > THRESH
        spike_ref[...] = jnp.where(fired, 1.0, 0.0).astype(spike_ref.dtype)
        mem_out_ref[...] = jnp.where(fired, 0.0, mem_new * DECAY).astype(
            mem_out_ref.dtype)


# ------------------------------- helpers ------------------------------------

def _round_up(n, m):
    return (n + m - 1) // m * m


def _pool_matrix(H, W, Ho, Wo):
    """(H*W, Ho*Wo) matrix with exact nn.AdaptiveAvgPool2d window weights.

    Handles non-divisible (overlapping-window) adaptive pooling exactly.
    Built once at trace time from static shapes (compile-time constant).
    """
    P = np.zeros((H * W, Ho * Wo), np.float32)
    for ho in range(Ho):
        h0 = (ho * H) // Ho
        h1 = -((-(ho + 1) * H) // Ho)          # ceil((ho+1)*H/Ho)
        for wo in range(Wo):
            w0 = (wo * W) // Wo
            w1 = -((-(wo + 1) * W) // Wo)
            inv = 1.0 / float((h1 - h0) * (w1 - w0))
            for h in range(h0, h1):
                P[h * W + w0:h * W + w1, ho * Wo + wo] = inv
    return P


def _pick_group(BC, HW, OW, p_cap_bytes=2 << 20, row_cap_bytes=2 << 20):
    """Channels per kernel row, so g*OW is a multiple of 128 (lane-dense out).

    Only grouped while the block-diagonal pooling matrix and a single x row
    stay small; otherwise g=1 (correct, just lane-sparse output stores).
    """
    for g in range(1, BC + 1):
        if BC % g or (g * OW) % 128:
            continue
        if g * g * HW * OW * 4 > p_cap_bytes or g * HW * 4 > row_cap_bytes:
            break
        return g
    return 1


def _vmem_budget():
    """(working-set budget, vmem_limit_bytes) derived from the chip's VMEM."""
    try:
        cap = pltpu.get_tpu_info().vmem_capacity_bytes
    except Exception:
        cap = 64 << 20                     # conservative (v7x-sized) default
    budget = min(cap // 4, 24 << 20)       # v7x: ~16 MiB, v5e/v6e: 24 MiB
    vmem_limit = min((cap * 3) // 4, 64 << 20)
    return budget, int(vmem_limit)


def _pick_k_tile(xw, ow_pad, budget):
    """Contraction-dim tile: a multiple-of-128 divisor of xw (or xw itself)."""
    if xw % 128:
        return xw                          # lane dim must equal full extent
    cap = max(128, budget // (32 * ow_pad))  # keep P's dbl-buffered block small
    if cap >= xw:
        return xw
    tk = (cap // 128) * 128
    while tk > 128 and xw % tk:
        tk -= 128
    return tk if xw % tk == 0 else 128


def _pick_row_tile(R, per_row_bytes, budget):
    """Largest row tile fitting the budget; >=2 grid steps when R >= 16."""
    cap = max(1, budget // max(1, per_row_bytes))
    if R >= 16:
        cap = min(cap, R // 2)             # v7x megacore + pipelining
    if cap >= R:
        return R
    cap = max(8, (cap // 8) * 8)
    t = cap
    while t >= 8 and R % t:
        t -= 8
    return t if t >= 8 else cap            # rare ragged tail -> partial block


# ------------------------------- wrapper ------------------------------------

@functools.partial(jax.jit, static_argnames=("out_size", "is_first"))
def snn_adaptive_avg_pool2d_forward(x, out_size, mem=None, is_first=True):
    """Fused AdaptiveAvgPool2d + LIF membrane/spike update.

    Returns (spike, mem_new), both (B, C, Ho, Wo); feed mem_new back with
    is_first=False for subsequent timesteps.  x may also be bf16 (the window
    sum is accumulated in f32 on the MXU); the mem state is kept in f32.
    """
    B, C, H, W = x.shape
    Ho, Wo = out_size
    BC, HW, OW = B * C, H * W, Ho * Wo

    g = _pick_group(BC, HW, OW)
    R = BC // g                       # kernel rows
    xw, ow = g * HW, g * OW           # kernel input / output row widths
    ow_pad = _round_up(ow, 128)

    budget, vmem_limit = _vmem_budget()
    tk = _pick_k_tile(xw, ow_pad, budget)
    nk = xw // tk
    # f32, double-buffered: x(tk) + mem + spike + mem_out, plus the accumulator.
    per_row = 8 * (_round_up(tk, 128) + 3 * ow_pad) + 4 * ow_pad
    p_bytes = 8 * _round_up(tk, 8) * ow_pad
    tr = _pick_row_tile(R, per_row, max(per_row, budget - p_bytes))
    grid = (pl.cdiv(R, tr), nk)       # reduction axis last, marked "arbitrary"

    # Constant pooling-weight matrix (block-diagonal across grouped channels).
    pmat = _pool_matrix(H, W, Ho, Wo)
    if g > 1:
        pmat = np.kron(np.eye(g, dtype=np.float32), pmat)
    pmat = jnp.asarray(pmat)

    x2 = x.reshape(R, xw)             # free reshape — no HBM copy / transpose

    x_spec = pl.BlockSpec((tr, tk), lambda i, k: (i, k))
    p_spec = pl.BlockSpec((tk, ow), lambda i, k: (k, 0))
    row_spec = pl.BlockSpec((tr, ow), lambda i, k: (i, 0))
    out_shape = (jax.ShapeDtypeStruct((R, ow), jnp.float32),
                 jax.ShapeDtypeStruct((R, ow), jnp.float32))
    scratch = [pltpu.VMEM((tr, ow), jnp.float32)]
    cparams = pltpu.CompilerParams(
        dimension_semantics=("parallel", "arbitrary"),
        vmem_limit_bytes=vmem_limit)

    if is_first:
        spike_f, mem_f = pl.pallas_call(
            _snn_pool_first_kernel,
            out_shape=out_shape,
            grid=grid,
            in_specs=[x_spec, p_spec],
            out_specs=(row_spec, row_spec),
            scratch_shapes=scratch,
            compiler_params=cparams,
        )(x2, pmat)
    else:
        mem_flat = mem.reshape(R, ow).astype(jnp.float32)
        spike_f, mem_f = pl.pallas_call(
            _snn_pool_kernel,
            out_shape=out_shape,
            grid=grid,
            in_specs=[x_spec, row_spec, p_spec],
            out_specs=(row_spec, row_spec),
            scratch_shapes=scratch,
            input_output_aliases={1: 1},   # update the mem state in place
            compiler_params=cparams,
        )(x2, mem_flat, pmat)

    spike = spike_f.reshape(B, C, Ho, Wo)
    mem_new = mem_f.reshape(B, C, Ho, Wo)
    return spike, mem_new


# ----------------------------- pure-JAX reference ---------------------------

def _adaptive_avg_pool_ref(x, Ho, Wo):
    B, C, H, W = x.shape
    kh, kw = H // Ho, W // Wo          # reference covers the divisible case
    return x.reshape(B, C, Ho, kh, Wo, kw).mean(axis=(3, 5))


def _reference_step(x, out_size, mem=None):
    Ho, Wo = out_size
    pooled = _adaptive_avg_pool_ref(x, Ho, Wo)
    mem_new = pooled if mem is None else mem + pooled
    spike = (mem_new > THRESH).astype(jnp.float32)
    mem_out = mem_new * DECAY * (1.0 - spike)
    return spike, mem_out, mem_new


if __name__ == "__main__":
    B, C, H, W = 2, 4, 16, 16
    out_size = (4, 4)

    key = jax.random.PRNGKey(0)
    k1, k2 = jax.random.split(key)
    x1 = jax.random.normal(k1, (B, C, H, W), jnp.float32)
    x2 = jax.random.normal(k2, (B, C, H, W), jnp.float32)

    # Timestep 1: is_first=True (mem starts at zero inside the module).
    spike1, mem1 = snn_adaptive_avg_pool2d_forward(
        x1, out_size=out_size, mem=None, is_first=True)
    # Timestep 2: is_first=False, threading the membrane state back in.
    spike2, mem2 = snn_adaptive_avg_pool2d_forward(
        x2, out_size=out_size, mem=mem1, is_first=False)
    jax.block_until_ready((spike1, mem1, spike2, mem2))

    # Verify against a pure-JAX reference of the module forward.  Elements
    # whose pre-reset membrane sits within eps of the threshold are excluded
    # (a hard comparator is not robust to matmul rounding).
    spike1_r, mem1_r, pre1 = _reference_step(x1, out_size, mem=None)
    spike2_r, mem2_r, pre2 = _reference_step(x2, out_size, mem=mem1_r)
    eps = 5e-3
    safe1 = jnp.abs(pre1 - THRESH) > eps
    safe2 = jnp.abs(pre2 - THRESH) > eps

    assert spike1.shape == (B, C, out_size[0], out_size[1])
    assert spike1.dtype == jnp.float32
    assert bool(jnp.all(jnp.where(safe1, spike1 == spike1_r, True)))
    assert bool(jnp.all(jnp.where(safe2, spike2 == spike2_r, True)))
    assert bool(jnp.all(jnp.where(safe1, jnp.abs(mem1 - mem1_r) < 1e-3, True)))
    assert bool(jnp.all(jnp.where(safe2, jnp.abs(mem2 - mem2_r) < 1e-3, True)))

    print("KERNEL_OK")
</pallas_src>

<mosaic_0001>
module attributes {stable_mosaic.version = 11 : i64} {
  func.func @_snn_pool_first_kernel(%arg0: i32, %arg1: i32, %arg2: memref<1x2048xf32, #tpu.memory_space<vmem>>, %arg3: memref<2048x128xf32, #tpu.memory_space<vmem>>, %arg4: memref<1x128xf32, #tpu.memory_space<vmem>>, %arg5: memref<1x128xf32, #tpu.memory_space<vmem>>, %arg6: memref<1x128xf32, #tpu.memory_space<vmem>>) attributes {dimension_semantics = [#tpu.dimension_semantics<parallel>, #tpu.dimension_semantics<arbitrary>], iteration_bounds = array<i64: 1, 1>, scalar_prefetch = 0 : i64, scratch_operands = 1 : i64, tpu.core_type = #tpu.core_type<tc>, window_params = [{transform_indices = @transform_0, window_bounds = array<i64: 1, 2048>}, {transform_indices = @transform_1, window_bounds = array<i64: 2048, 128>}, {transform_indices = @transform_2, window_bounds = array<i64: 1, 128>}, {transform_indices = @transform_3, window_bounds = array<i64: 1, 128>}]} {
    %c0_i32 = arith.constant 0 : i32
    %0 = arith.cmpi eq, %arg1, %c0_i32 : i32
    %1 = arith.extui %0 : i1 to i32
    %c0_i32_0 = arith.constant 0 : i32
    %2 = arith.cmpi ne, %1, %c0_i32_0 : i32
    scf.if %2 {
      %cst_10 = arith.constant 0.000000e+00 : f32
      %12 = vector.broadcast %cst_10 : f32 to vector<1x128xf32>
      %c0_11 = arith.constant 0 : index
      %c0_12 = arith.constant 0 : index
      %13 = vector.load %arg6[%c0_11, %c0_12] : memref<1x128xf32, #tpu.memory_space<vmem>>, vector<1x128xf32>
      tpu.vector_store %arg6[%c0_11, %c0_12], %12 {strides = array<i32>} : memref<1x128xf32, #tpu.memory_space<vmem>>, vector<1x128xf32>,
    } else {
    }
    %c0 = arith.constant 0 : index
    %c0_1 = arith.constant 0 : index
    %3 = vector.load %arg6[%c0, %c0_1] : memref<1x128xf32, #tpu.memory_space<vmem>>, vector<1x128xf32>
    %c0_2 = arith.constant 0 : index
    %c0_3 = arith.constant 0 : index
    %4 = vector.load %arg2[%c0_2, %c0_3] : memref<1x2048xf32, #tpu.memory_space<vmem>>, vector<1x2048xf32>
    %c0_4 = arith.constant 0 : index
    %c0_5 = arith.constant 0 : index
    %5 = vector.load %arg3[%c0_4, %c0_5] : memref<2048x128xf32, #tpu.memory_space<vmem>>, vector<2048x128xf32>
    %cst = arith.constant dense<0.000000e+00> : vector<1x128xf32>
    %6 = tpu.matmul %4, %5, %cst {dimension_numbers = #tpu.dot_dimension_numbers<[1], [0], [0], [1], [0, 0, 1, 1], [], []>} : vector<1x2048xf32>, vector<2048x128xf32>, vector<1x128xf32> -> vector<1x128xf32>
    %7 = arith.addf %3, %6 : vector<1x128xf32>
    %c0_6 = arith.constant 0 : index
    %c0_7 = arith.constant 0 : index
    %8 = vector.load %arg6[%c0_6, %c0_7] : memref<1x128xf32, #tpu.memory_space<vmem>>, vector<1x128xf32>
    tpu.vector_store %arg6[%c0_6, %c0_7], %7 {strides = array<i32>} : memref<1x128xf32, #tpu.memory_space<vmem>>, vector<1x128xf32>,
    %c0_i32_8 = arith.constant 0 : i32
    %9 = arith.cmpi eq, %arg1, %c0_i32_8 : i32
    %10 = arith.extui %9 : i1 to i32
    %c0_i32_9 = arith.constant 0 : i32
    %11 = arith.cmpi ne, %10, %c0_i32_9 : i32
    scf.if %11 {
      %c0_10 = arith.constant 0 : index
      %c0_11 = arith.constant 0 : index
      %12 = vector.load %arg6[%c0_10, %c0_11] : memref<1x128xf32, #tpu.memory_space<vmem>>, vector<1x128xf32>
      %cst_12 = arith.constant 5.000000e-01 : f32
      %13 = vector.broadcast %cst_12 : f32 to vector<1x128xf32>
      %14 = arith.cmpf ogt, %12, %13 : vector<1x128xf32>
      %cst_13 = arith.constant 1.000000e+00 : f32
      %cst_14 = arith.constant 0.000000e+00 : f32
      %15 = vector.broadcast %cst_13 : f32 to vector<1x128xf32>
      %16 = vector.broadcast %cst_14 : f32 to vector<1x128xf32>
      %17 = arith.select %14, %15, %16 : vector<1x128xi1>, vector<1x128xf32>
      %c0_15 = arith.constant 0 : index
      %c0_16 = arith.constant 0 : index
      %18 = vector.load %arg4[%c0_15, %c0_16] : memref<1x128xf32, #tpu.memory_space<vmem>>, vector<1x128xf32>
      tpu.vector_store %arg4[%c0_15, %c0_16], %17 {strides = array<i32>} : memref<1x128xf32, #tpu.memory_space<vmem>>, vector<1x128xf32>,
      %cst_17 = arith.constant 2.000000e-01 : f32
      %19 = vector.broadcast %cst_17 : f32 to vector<1x128xf32>
      %20 = arith.mulf %12, %19 : vector<1x128xf32>
      %cst_18 = arith.constant 0.000000e+00 : f32
      %21 = vector.broadcast %cst_18 : f32 to vector<1x128xf32>
      %22 = arith.select %14, %21, %20 : vector<1x128xi1>, vector<1x128xf32>
      %c0_19 = arith.constant 0 : index
      %c0_20 = arith.constant 0 : index
      %23 = vector.load %arg5[%c0_19, %c0_20] : memref<1x128xf32, #tpu.memory_space<vmem>>, vector<1x128xf32>
      tpu.vector_store %arg5[%c0_19, %c0_20], %22 {strides = array<i32>} : memref<1x128xf32, #tpu.memory_space<vmem>>, vector<1x128xf32>,
    } else {
    }
    return
  }
  func.func @transform_0(%arg0: i32, %arg1: i32) -> (i32, i32) {
    %c0_i32 = arith.constant 0 : i32
    return %arg0, %arg1 : i32, i32
  }
  func.func @transform_1(%arg0: i32, %arg1: i32) -> (i32, i32) {
    %c0_i32 = arith.constant 0 : i32
    %c0_i32_0 = arith.constant 0 : i32
    return %arg1, %c0_i32 : i32, i32
  }
  func.func @transform_2(%arg0: i32, %arg1: i32) -> (i32, i32) {
    %c0_i32 = arith.constant 0 : i32
    %c0_i32_0 = arith.constant 0 : i32
    return %arg0, %c0_i32 : i32, i32
  }
  func.func @transform_3(%arg0: i32, %arg1: i32) -> (i32, i32) {
    %c0_i32 = arith.constant 0 : i32
    %c0_i32_0 = arith.constant 0 : i32
    return %arg0, %c0_i32 : i32, i32
  }
}

</mosaic_0001>

<bundles_post_ra>
// kernel: snn_adaptive_avg_pool2d_forward.1
= control target key start
LH: loop header
LB: loop body
LE: loop exit
PB: predicated region body
PF: predicated region fallthrough
CT: control target
= control target key end

     0   :  { %9 = vsyncpa [#allocation4], 0  ;;  %s1260_s12 = smov [#allocation3]   ;;  %s1361_s0 = inlined_call_operand.vmem [shape: f32[1,2048], index: 0, kind: input, shape index: {}]   ;;  %s1362_s1 = inlined_call_operand.hbm [shape: f32[2048,128], index: 1, kind: input, shape index: {}]   ;;  %s1363_s2 = inlined_call_operand.vmem [shape: f32[1,128], index: 2, kind: output, shape index: {0}]   ;;  %s1364_s3 = inlined_call_operand.vmem [shape: f32[1,128], index: 3, kind: output, shape index: {1}]  }
   0x1   :  { %s17_s13 = sshll.u32 %s1260_s12, 4  ;;  %s18_s13 = int_to_ptr.vmem [resolvable:$true] %s17_s13 }
   0x2   :  { %s1246_s14 = scalar_lea.vmem %s18_s13, 32768  ;;  %p1251_p1 = scmp.lt.s32.totalorder %s18_s13, %s18_s13 }
   0x3   :  { %p1247_p0 = scmp.ne.s32.totalorder %s18_s13, %s1246_s14  ;;  %p1252_p2 = scmp.lt.s32.totalorder %s1246_s14, %s1246_s14 }
   0x5   :  { %p1253_p3 = por %p1252_p2, %p1251_p1 }
   0x7   :  { %p1254_p4 = pnand %p1253_p3, %p1247_p0 }
   0x9   :  { %1257 = shalt.err (!%p1254_p4)
}
   0xa   :  { %s1261_s15 = smov 128   ;;  %s1262_s16 = smov 8  }
   0xb   :  { %23 = dma.hbm_to_vmem [thread:$0]  %s1362_s1, 32768, %s18_s13, [#allocation4], %s1261_s15, %s1261_s15, %s1262_s16  }
   0xc   :  { %1258 = dma.done.wait [#allocation4], 32768  }
   0xd   :  { %1259 = vsyncadd [#allocation4], 4294934528  ;;  %v66_v0 = vld [vmem:[#allocation3 + $0xf8] sm:$0xff]  ;;  %v65_v4 = vld [vmem:[#allocation3 + $0xf0] sm:$0xff]  ;;  %v293_v38 = vlaneseq }
   0xe   :  { %v98_v1 = vld [vmem:[#allocation3 + $0x1f8] sm:$0xff]  ;;  %954 = vmatprep.subr.mxu0 %v66_v0  ;;  %v97_v5 = vld [vmem:[#allocation3 + $0x1f0] sm:$0xff]  ;;  %v64_v8 = vld [vmem:[#allocation3 + $0xe8] sm:$0xff] }
   0xf   :  { %v50_v2 = vld [vmem:[#allocation3 + $0x78] sm:$0xff]  ;;  %989 = vmatprep.subr.mxu1 %v98_v1  ;;  %v49_v6 = vld [vmem:[#allocation3 + $0x70] sm:$0xff]  ;;  %v96_v9 = vld [vmem:[#allocation3 + $0x1e8] sm:$0xff]  ;;  %v1287_v47 = vshrl.u32 %v293_v38, 7 }
  0x10   :  { %v82_v3 = vld [vmem:[#allocation3 + $0x178] sm:$0xff]  ;;  %955 = vmatpush3.msra.mxu0 %v50_v2  ;;  %v81_v7 = vld [vmem:[#allocation3 + $0x170] sm:$0xff]  ;;  %v48_v10 = vld [vmem:[#allocation3 + $0x68] sm:$0xff] }
  0x11   :  { %990 = vmatpush3.msra.mxu1 %v82_v3  ;;  %956 = vmatprep.subr.mxu0 %v65_v4  ;;  %v80_v11 = vld [vmem:[#allocation3 + $0x168] sm:$0xff]  ;;  %v63_v12 = vld [vmem:[#allocation3 + $0xe0] sm:$0xff]  ;;  %v62_v16 = vld [vmem:[#allocation3 + $0xd8] sm:$0xff]  ;;  %v299_v56 = vsub.s32 1, %v1287_v47  ;;  %v307_v60 = vsub.s32 3, %v1287_v47  ;;  %v295_v63 = vsub.s32 0, %v1287_v47 }
  0x12   :  { %991 = vmatprep.subr.mxu1 %v97_v5  ;;  %957 = vmatpush3.msra.mxu0 %v49_v6  ;;  %v95_v13 = vld [vmem:[#allocation3 + $0x1e0] sm:$0xff]  ;;  %v94_v17 = vld [vmem:[#allocation3 + $0x1d8] sm:$0xff]  ;;  %v61_v20 = vld [vmem:[#allocation3 + $0xd0] sm:$0xff]  ;;  %v303_v0 = vsub.s32 2, %v1287_v47 }
  0x13   :  { %992 = vmatpush3.msra.mxu1 %v81_v7  ;;  %958 = vmatprep.subr.mxu0 %v64_v8  ;;  %v47_v14 = vld [vmem:[#allocation3 + $0x60] sm:$0xff]  ;;  %v46_v18 = vld [vmem:[#allocation3 + $0x58] sm:$0xff]  ;;  %v93_v21 = vld [vmem:[#allocation3 + $0x1d0] sm:$0xff] }
  0x14   :  { %993 = vmatprep.subr.mxu1 %v96_v9  ;;  %v79_v15 = vld [vmem:[#allocation3 + $0x160] sm:$0xff]  ;;  %959 = vmatpush3.msra.mxu0 %v48_v10  ;;  %v78_v19 = vld [vmem:[#allocation3 + $0x158] sm:$0xff]  ;;  %v45_v22 = vld [vmem:[#allocation3 + $0x50] sm:$0xff] }
  0x15   :  { %994 = vmatpush3.msra.mxu1 %v80_v11  ;;  %960 = vmatprep.subr.mxu0 %v63_v12  ;;  %v77_v23 = vld [vmem:[#allocation3 + $0x150] sm:$0xff]  ;;  %v60_v24 = vld [vmem:[#allocation3 + $0xc8] sm:$0xff]  ;;  %v59_v28 = vld [vmem:[#allocation3 + $0xc0] sm:$0xff] }
  0x16   :  { %995 = vmatprep.subr.mxu1 %v95_v13  ;;  %961 = vmatpush3.msra.mxu0 %v47_v14  ;;  %v92_v25 = vld [vmem:[#allocation3 + $0x1c8] sm:$0xff]  ;;  %v91_v29 = vld [vmem:[#allocation3 + $0x1c0] sm:$0xff]  ;;  %v58_v32 = vld [vmem:[#allocation3 + $0xb8] sm:$0xff] }
  0x17   :  { %996 = vmatpush3.msra.mxu1 %v79_v15  ;;  %962 = vmatprep.subr.mxu0 %v62_v16  ;;  %v44_v26 = vld [vmem:[#allocation3 + $0x48] sm:$0xff]  ;;  %v43_v30 = vld [vmem:[#allocation3 + $0x40] sm:$0xff]  ;;  %v90_v33 = vld [vmem:[#allocation3 + $0x1b8] sm:$0xff] }
  0x18   :  { %997 = vmatprep.subr.mxu1 %v94_v17  ;;  %963 = vmatpush3.msra.mxu0 %v46_v18  ;;  %v76_v27 = vld [vmem:[#allocation3 + $0x148] sm:$0xff]  ;;  %v75_v31 = vld [vmem:[#allocation3 + $0x140] sm:$0xff]  ;;  %v42_v34 = vld [vmem:[#allocation3 + $0x38] sm:$0xff] }
  0x19   :  { %998 = vmatpush3.msra.mxu1 %v78_v19  ;;  %964 = vmatprep.subr.mxu0 %v61_v20  ;;  %v74_v35 = vld [vmem:[#allocation3 + $0x138] sm:$0xff]  ;;  %v57_v36 = vld [vmem:[#allocation3 + $0xb0] sm:$0xff]  ;;  %v56_v41 = vld [vmem:[#allocation3 + $0xa8] sm:$0xff] }
  0x1a   :  { %999 = vmatprep.subr.mxu1 %v93_v21  ;;  %965 = vmatpush3.msra.mxu0 %v45_v22  ;;  %v89_v37 = vld [vmem:[#allocation3 + $0x1b0] sm:$0xff]  ;;  %v88_v42 = vld [vmem:[#allocation3 + $0x1a8] sm:$0xff]  ;;  %v55_v45 = vld [vmem:[#allocation3 + $0xa0] sm:$0xff] }
  0x1b   :  { %1000 = vmatpush3.msra.mxu1 %v77_v23  ;;  %966 = vmatprep.subr.mxu0 %v60_v24  ;;  %v41_v39 = vld [vmem:[#allocation3 + $0x30] sm:$0xff]  ;;  %v40_v43 = vld [vmem:[#allocation3 + $0x28] sm:$0xff]  ;;  %v87_v46 = vld [vmem:[#allocation3 + $0x1a0] sm:$0xff] }
  0x1c   :  { %1001 = vmatprep.subr.mxu1 %v92_v25  ;;  %967 = vmatpush3.msra.mxu0 %v44_v26  ;;  %v73_v40 = vld [vmem:[#allocation3 + $0x130] sm:$0xff]  ;;  %v72_v44 = vld [vmem:[#allocation3 + $0x128] sm:$0xff]  ;;  %v39_v48 = vld [vmem:[#allocation3 + $0x20] sm:$0xff] }
  0x1d   :  { %1002 = vmatpush3.msra.mxu1 %v76_v27  ;;  %968 = vmatprep.subr.mxu0 %v59_v28  ;;  %v71_v49 = vld [vmem:[#allocation3 + $0x120] sm:$0xff]  ;;  %v54_v50 = vld [vmem:[#allocation3 + $0x98] sm:$0xff]  ;;  %v53_v54 = vld [vmem:[#allocation3 + $0x90] sm:$0xff] }
  0x1e   :  { %1003 = vmatprep.subr.mxu1 %v91_v29  ;;  %969 = vmatpush3.msra.mxu0 %v43_v30  ;;  %v86_v51 = vld [vmem:[#allocation3 + $0x198] sm:$0xff]  ;;  %v85_v55 = vld [vmem:[#allocation3 + $0x190] sm:$0xff]  ;;  %v52_v61 = vld [vmem:[#allocation3 + $0x88] sm:$0xff] }
  0x1f   :  { %1004 = vmatpush3.msra.mxu1 %v75_v31  ;;  %970 = vmatprep.subr.mxu0 %v58_v32  ;;  %v38_v52 = vld [vmem:[#allocation3 + $0x18] sm:$0xff]  ;;  %v37_v57 = vld [vmem:[#allocation3 + $0x10] sm:$0xff]  ;;  %v84_v62 = vld [vmem:[#allocation3 + $0x188] sm:$0xff] }
  0x20   :  { %1005 = vmatprep.subr.mxu1 %v90_v33  ;;  %971 = vmatpush3.msra.mxu0 %v42_v34  ;;  %v70_v53 = vld [vmem:[#allocation3 + $0x118] sm:$0xff]  ;;  %v69_v58 = vld [vmem:[#allocation3 + $0x110] sm:$0xff]  ;;  %v36_v1 = vld [vmem:[#allocation3 + $0x8] sm:$0xff] }
  0x21   :  { %1006 = vmatpush3.msra.mxu1 %v74_v35  ;;  %972 = vmatprep.subr.mxu0 %v57_v36  ;;  %v1293_v59 = vld [vmem:[%s1361_s0] sm:$0xff]  ;;  %v68_v2 = vld [vmem:[#allocation3 + $0x108] sm:$0xff]  ;;  %v129_v15 = vld [vmem:[#allocation3 + $0x2f0] sm:$0xff] }
  0x22   :  { %1007 = vmatprep.subr.mxu1 %v89_v37  ;;  %973 = vmatpush3.msra.mxu0 %v41_v39  ;;  %v51_v3 = vld [vmem:[#allocation3 + $0x80] sm:$0xff]  ;;  %v300_v5 = vrot.slane %v1293_v59, %v299_v56  ;;  %v308_v7 = vrot.slane %v1293_v59, %v307_v60  ;;  %v296_v9 = vrot.slane %v1293_v59, %v295_v63  ;;  %v130_v11 = vld [vmem:[#allocation3 + $0x2f8] sm:$0xff]  ;;  %v161_v16 = vld [vmem:[#allocation3 + $0x3f0] sm:$0xff] }
  0x23   :  { %1008 = vmatpush3.msra.mxu1 %v73_v40  ;;  %974 = vmatprep.subr.mxu0 %v56_v41  ;;  %v83_v4 = vld [vmem:[#allocation3 + $0x180] sm:$0xff]  ;;  %v304_v10 = vrot.slane %v1293_v59, %v303_v0  ;;  %v162_v12 = vld [vmem:[#allocation3 + $0x3f8] sm:$0xff]  ;;  %v113_v17 = vld [vmem:[#allocation3 + $0x270] sm:$0xff] }
  0x24   :  { %1009 = vmatprep.subr.mxu1 %v88_v42  ;;  %975 = vmatpush3.msra.mxu0 %v40_v43  ;;  %v35_v6 = vld [vmem:[#allocation3] sm:$0xff]  ;;  %v114_v13 = vld [vmem:[#allocation3 + $0x278] sm:$0xff]  ;;  %v145_v18 = vld [vmem:[#allocation3 + $0x370] sm:$0xff] }
  0x25   :  { %1010 = vmatpush3.msra.mxu1 %v72_v44  ;;  %976 = vmatprep.subr.mxu0 %v55_v45  ;;  %v67_v8 = vld [vmem:[#allocation3 + $0x100] sm:$0xff]  ;;  %v146_v14 = vld [vmem:[#allocation3 + $0x378] sm:$0xff]  ;;  %v128_v19 = vld [vmem:[#allocation3 + $0x2e8] sm:$0xff] }
  0x26   :  { %1011 = vmatprep.subr.mxu1 %v87_v46  ;;  %977 = vmatpush3.msra.mxu0 %v39_v48  ;;  %v160_v20 = vld [vmem:[#allocation3 + $0x3e8] sm:$0xff]  ;;  %v127_v23 = vld [vmem:[#allocation3 + $0x2e0] sm:$0xff]  ;;  %v126_v27 = vld [vmem:[#allocation3 + $0x2d8] sm:$0xff] }
  0x27   :  { %1012 = vmatpush3.msra.mxu1 %v71_v49  ;;  %978 = vmatprep.subr.mxu0 %v54_v50  ;;  %v112_v21 = vld [vmem:[#allocation3 + $0x268] sm:$0xff]  ;;  %v159_v24 = vld [vmem:[#allocation3 + $0x3e0] sm:$0xff]  ;;  %v158_v28 = vld [vmem:[#allocation3 + $0x3d8] sm:$0xff] }
  0x28   :  { %1013 = vmatprep.subr.mxu1 %v86_v51  ;;  %979 = vmatpush3.msra.mxu0 %v38_v52  ;;  %v144_v22 = vld [vmem:[#allocation3 + $0x368] sm:$0xff]  ;;  %v111_v25 = vld [vmem:[#allocation3 + $0x260] sm:$0xff]  ;;  %v110_v29 = vld [vmem:[#allocation3 + $0x258] sm:$0xff] }
  0x29   :  { %1014 = vmatpush3.msra.mxu1 %v70_v53  ;;  %980 = vmatprep.subr.mxu0 %v53_v54  ;;  %v143_v26 = vld [vmem:[#allocation3 + $0x360] sm:$0xff]  ;;  %v142_v30 = vld [vmem:[#allocation3 + $0x358] sm:$0xff]  ;;  %v125_v31 = vld [vmem:[#allocation3 + $0x2d0] sm:$0xff] }
  0x2a   :  { %1015 = vmatprep.subr.mxu1 %v85_v55  ;;  %981 = vmatpush3.msra.mxu0 %v37_v57  ;;  %v157_v32 = vld [vmem:[#allocation3 + $0x3d0] sm:$0xff]  ;;  %v124_v35 = vld [vmem:[#allocation3 + $0x2c8] sm:$0xff]  ;;  %v123_v39 = vld [vmem:[#allocation3 + $0x2c0] sm:$0xff] }
  0x2b   :  { %1016 = vmatpush3.msra.mxu1 %v69_v58  ;;  %982 = vmatprep.subr.mxu0 %v52_v61  ;;  %v109_v33 = vld [vmem:[#allocation3 + $0x250] sm:$0xff]  ;;  %v156_v36 = vld [vmem:[#allocation3 + $0x3c8] sm:$0xff]  ;;  %v155_v40 = vld [vmem:[#allocation3 + $0x3c0] sm:$0xff] }
  0x2c   :  { %1017 = vmatprep.subr.mxu1 %v84_v62  ;;  %983 = vmatpush3.msra.mxu0 %v36_v1  ;;  %v141_v34 = vld [vmem:[#allocation3 + $0x350] sm:$0xff]  ;;  %v108_v37 = vld [vmem:[#allocation3 + $0x248] sm:$0xff]  ;;  %v107_v41 = vld [vmem:[#allocation3 + $0x240] sm:$0xff] }
  0x2d   :  { %1018 = vmatpush3.msra.mxu1 %v68_v2  ;;  %984 = vmatprep.subr.mxu0 %v51_v3  ;;  %v140_v38 = vld [vmem:[#allocation3 + $0x348] sm:$0xff]  ;;  %v139_v42 = vld [vmem:[#allocation3 + $0x340] sm:$0xff]  ;;  %v122_v43 = vld [vmem:[#allocation3 + $0x2b8] sm:$0xff] }
  0x2e   :  { %1019 = vmatprep.subr.mxu1 %v83_v4  ;;  %985 = vmatpush3.msra.mxu0 %v35_v6  ;;  %v154_v44 = vld [vmem:[#allocation3 + $0x3b8] sm:$0xff]  ;;  %v121_v48 = vld [vmem:[#allocation3 + $0x2b0] sm:$0xff]  ;;  %v120_v52 = vld [vmem:[#allocation3 + $0x2a8] sm:$0xff] }
  0x2f   :  { %437 = vmatprep.mubr.f32.mxu0 %v300_v5  ;;  %1020 = vmatpush3.msra.mxu1 %v67_v8  ;;  %v106_v45 = vld [vmem:[#allocation3 + $0x238] sm:$0xff]  ;;  %v153_v49 = vld [vmem:[#allocation3 + $0x3b0] sm:$0xff]  ;;  %v152_v53 = vld [vmem:[#allocation3 + $0x3a8] sm:$0xff] }
  0x30   :  { %507 = vmatprep.mubr.f32.mxu1 %v308_v7  ;;  %438 = vmatmul.mubr.f32.vlgmr.msra.gmra.mxu0 %v296_v9  ;;  %v138_v46 = vld [vmem:[#allocation3 + $0x338] sm:$0xff]  ;;  %v105_v50 = vld [vmem:[#allocation3 + $0x230] sm:$0xff]  ;;  %v104_v54 = vld [vmem:[#allocation3 + $0x228] sm:$0xff]  ;;  %v315_v7 = vsub.s32 5, %v1287_v47 }
  0x31   :  { %508 = vmatmul.mubr.f32.vlgmr.msra.gmra.mxu1 %v304_v10  ;;  %1024 = vmatprep.subr.mxu0 %v130_v11  ;;  %v137_v51 = vld [vmem:[#allocation3 + $0x330] sm:$0xff]  ;;  %v136_v55 = vld [vmem:[#allocation3 + $0x328] sm:$0xff]  ;;  %v119_v57 = vld [vmem:[#allocation3 + $0x2a0] sm:$0xff]  ;;  %v311_v10 = vsub.s32 4, %v1287_v47 }
  0x32   :  { %1059 = vmatprep.subr.mxu1 %v162_v12  ;;  %1025 = vmatpush3.msra.mxu0 %v114_v13  ;;  %v151_v58 = vld [vmem:[#allocation3 + $0x3a0] sm:$0xff]  ;;  %v118_v1 = vld [vmem:[#allocation3 + $0x298] sm:$0xff]  ;;  %v117_v5 = vld [vmem:[#allocation3 + $0x290] sm:$0xff]  ;;  %v323_v13 = vsub.s32 7, %v1287_v47 }
  0x33   :  { %1060 = vmatpush3.msra.mxu1 %v146_v14  ;;  %1026 = vmatprep.subr.mxu0 %v129_v15  ;;  %v103_v61 = vld [vmem:[#allocation3 + $0x220] sm:$0xff]  ;;  %v150_v2 = vld [vmem:[#allocation3 + $0x398] sm:$0xff]  ;;  %v149_v6 = vld [vmem:[#allocation3 + $0x390] sm:$0xff] }
  0x34   :  { %1061 = vmatprep.subr.mxu1 %v161_v16  ;;  %1027 = vmatpush3.msra.mxu0 %v113_v17  ;;  %v135_v62 = vld [vmem:[#allocation3 + $0x320] sm:$0xff]  ;;  %v102_v3 = vld [vmem:[#allocation3 + $0x218] sm:$0xff]  ;;  %v101_v8 = vld [vmem:[#allocation3 + $0x210] sm:$0xff]  ;;  %v319_v16 = vsub.s32 6, %v1287_v47 }
  0x35   :  { %1062 = vmatpush3.msra.mxu1 %v145_v18  ;;  %1028 = vmatprep.subr.mxu0 %v128_v19  ;;  %v134_v4 = vld [vmem:[#allocation3 + $0x318] sm:$0xff]  ;;  %v133_v9 = vld [vmem:[#allocation3 + $0x310] sm:$0xff]  ;;  %v116_v11 = vld [vmem:[#allocation3 + $0x288] sm:$0xff]  ;;  %v316_v19 = vrot.slane %v1293_v59, %v315_v7 }
  0x36   :  { %1063 = vmatprep.subr.mxu1 %v160_v20  ;;  %1029 = vmatpush3.msra.mxu0 %v112_v21  ;;  %v148_v12 = vld [vmem:[#allocation3 + $0x388] sm:$0xff]  ;;  %v115_v17 = vld [vmem:[#allocation3 + $0x280] sm:$0xff]  ;;  %v312_v21 = vrot.slane %v1293_v59, %v311_v10 }
  0x37   :  { %1064 = vmatpush3.msra.mxu1 %v144_v22  ;;  %1030 = vmatprep.subr.mxu0 %v127_v23  ;;  %v100_v14 = vld [vmem:[#allocation3 + $0x208] sm:$0xff]  ;;  %v147_v18 = vld [vmem:[#allocation3 + $0x380] sm:$0xff]  ;;  %v324_v23 = vrot.slane %v1293_v59, %v323_v13 }
  0x38   :  { %1065 = vmatprep.subr.mxu1 %v159_v24  ;;  %1031 = vmatpush3.msra.mxu0 %v111_v25  ;;  %v132_v15 = vld [vmem:[#allocation3 + $0x308] sm:$0xff]  ;;  %v99_v20 = vld [vmem:[#allocation3 + $0x200] sm:$0xff]  ;;  %v194_v24 = vld [vmem:[#allocation3 + $0x4f8] sm:$0xff]  ;;  %v320_v25 = vrot.slane %v1293_v59, %v319_v16 }
  0x39   :  { %1066 = vmatpush3.msra.mxu1 %v143_v26  ;;  %1032 = vmatprep.subr.mxu0 %v126_v27  ;;  %v131_v22 = vld [vmem:[#allocation3 + $0x300] sm:$0xff]  ;;  %v226_v26 = vld [vmem:[#allocation3 + $0x5f8] sm:$0xff]  ;;  %v176_v59 = vld [vmem:[#allocation3 + $0x468] sm:$0xff] }
  0x3a   :  { %1067 = vmatprep.subr.mxu1 %v158_v28  ;;  %1033 = vmatpush3.msra.mxu0 %v110_v29  ;;  %v178_v27 = vld [vmem:[#allocation3 + $0x478] sm:$0xff]  ;;  %v193_v29 = vld [vmem:[#allocation3 + $0x4f0] sm:$0xff] }
  0x3b   :  { %1068 = vmatpush3.msra.mxu1 %v142_v30  ;;  %1034 = vmatprep.subr.mxu0 %v125_v31  ;;  %v210_v28 = vld [vmem:[#allocation3 + $0x578] sm:$0xff]  ;;  %v225_v30 = vld [vmem:[#allocation3 + $0x5f0] sm:$0xff] }
  0x3c   :  { %1069 = vmatprep.subr.mxu1 %v157_v32  ;;  %1035 = vmatpush3.msra.mxu0 %v109_v33  ;;  %v177_v31 = vld [vmem:[#allocation3 + $0x470] sm:$0xff]  ;;  %v192_v33 = vld [vmem:[#allocation3 + $0x4e8] sm:$0xff] }
  0x3d   :  { %1070 = vmatpush3.msra.mxu1 %v141_v34  ;;  %1036 = vmatprep.subr.mxu0 %v124_v35  ;;  %v209_v32 = vld [vmem:[#allocation3 + $0x570] sm:$0xff]  ;;  %v224_v34 = vld [vmem:[#allocation3 + $0x5e8] sm:$0xff] }
  0x3e   :  { %1071 = vmatprep.subr.mxu1 %v156_v36  ;;  %1037 = vmatpush3.msra.mxu0 %v108_v37  ;;  %v208_v35 = vld [vmem:[#allocation3 + $0x568] sm:$0xff]  ;;  %v191_v36 = vld [vmem:[#allocation3 + $0x4e0] sm:$0xff] }
  0x3f   :  { %1072 = vmatpush3.msra.mxu1 %v140_v38  ;;  %1038 = vmatprep.subr.mxu0 %v123_v39  ;;  %v223_v37 = vld [vmem:[#allocation3 + $0x5e0] sm:$0xff] }
  0x40   :  { %1073 = vmatprep.subr.mxu1 %v155_v40  ;;  %1039 = vmatpush3.msra.mxu0 %v107_v41  ;;  %v175_v38 = vld [vmem:[#allocation3 + $0x460] sm:$0xff]  ;;  %v190_v40 = vld [vmem:[#allocation3 + $0x4d8] sm:$0xff] }
  0x41   :  { %1074 = vmatpush3.msra.mxu1 %v139_v42  ;;  %1040 = vmatprep.subr.mxu0 %v122_v43  ;;  %v207_v39 = vld [vmem:[#allocation3 + $0x560] sm:$0xff]  ;;  %v222_v41 = vld [vmem:[#allocation3 + $0x5d8] sm:$0xff] }
  0x42   :  { %1075 = vmatprep.subr.mxu1 %v154_v44  ;;  %1041 = vmatpush3.msra.mxu0 %v106_v45  ;;  %v174_v42 = vld [vmem:[#allocation3 + $0x458] sm:$0xff]  ;;  %v189_v44 = vld [vmem:[#allocation3 + $0x4d0] sm:$0xff] }
  0x43   :  { %1076 = vmatpush3.msra.mxu1 %v138_v46  ;;  %1042 = vmatprep.subr.mxu0 %v121_v48  ;;  %v206_v43 = vld [vmem:[#allocation3 + $0x558] sm:$0xff]  ;;  %v221_v45 = vld [vmem:[#allocation3 + $0x5d0] sm:$0xff] }
  0x44   :  { %1077 = vmatprep.subr.mxu1 %v153_v49  ;;  %1043 = vmatpush3.msra.mxu0 %v105_v50  ;;  %v173_v46 = vld [vmem:[#allocation3 + $0x450] sm:$0xff]  ;;  %v188_v49 = vld [vmem:[#allocation3 + $0x4c8] sm:$0xff] }
  0x45   :  { %1078 = vmatpush3.msra.mxu1 %v137_v51  ;;  %1044 = vmatprep.subr.mxu0 %v120_v52  ;;  %v205_v48 = vld [vmem:[#allocation3 + $0x550] sm:$0xff]  ;;  %v220_v50 = vld [vmem:[#allocation3 + $0x5c8] sm:$0xff] }
  0x46   :  { %1079 = vmatprep.subr.mxu1 %v152_v53  ;;  %1045 = vmatpush3.msra.mxu0 %v104_v54  ;;  %v172_v51 = vld [vmem:[#allocation3 + $0x448] sm:$0xff]  ;;  %v187_v53 = vld [vmem:[#allocation3 + $0x4c0] sm:$0xff] }
  0x47   :  { %1080 = vmatpush3.msra.mxu1 %v136_v55  ;;  %1046 = vmatprep.subr.mxu0 %v119_v57  ;;  %v204_v52 = vld [vmem:[#allocation3 + $0x548] sm:$0xff]  ;;  %v219_v54 = vld [vmem:[#allocation3 + $0x5c0] sm:$0xff] }
  0x48   :  { %1081 = vmatprep.subr.mxu1 %v151_v58  ;;  %1047 = vmatpush3.msra.mxu0 %v103_v61  ;;  %v171_v55 = vld [vmem:[#allocation3 + $0x440] sm:$0xff]  ;;  %v186_v58 = vld [vmem:[#allocation3 + $0x4b8] sm:$0xff] }
  0x49   :  { %1082 = vmatpush3.msra.mxu1 %v135_v62  ;;  %1048 = vmatprep.subr.mxu0 %v118_v1  ;;  %v203_v57 = vld [vmem:[#allocation3 + $0x540] sm:$0xff]  ;;  %v218_v61 = vld [vmem:[#allocation3 + $0x5b8] sm:$0xff] }
  0x4a   :  { %1083 = vmatprep.subr.mxu1 %v150_v2  ;;  %1049 = vmatpush3.msra.mxu0 %v102_v3  ;;  %v170_v62 = vld [vmem:[#allocation3 + $0x438] sm:$0xff]  ;;  %v185_v2 = vld [vmem:[#allocation3 + $0x4b0] sm:$0xff] }
  0x4b   :  { %1084 = vmatpush3.msra.mxu1 %v134_v4  ;;  %1050 = vmatprep.subr.mxu0 %v117_v5  ;;  %v202_v1 = vld [vmem:[#allocation3 + $0x538] sm:$0xff]  ;;  %v217_v3 = vld [vmem:[#allocation3 + $0x5b0] sm:$0xff] }
  0x4c   :  { %1085 = vmatprep.subr.mxu1 %v149_v6  ;;  %1051 = vmatpush3.msra.mxu0 %v101_v8  ;;  %v169_v4 = vld [vmem:[#allocation3 + $0x430] sm:$0xff]  ;;  %v184_v6 = vld [vmem:[#allocation3 + $0x4a8] sm:$0xff] }
  0x4d   :  { %1086 = vmatpush3.msra.mxu1 %v133_v9  ;;  %1052 = vmatprep.subr.mxu0 %v116_v11  ;;  %v201_v5 = vld [vmem:[#allocation3 + $0x530] sm:$0xff]  ;;  %v216_v8 = vld [vmem:[#allocation3 + $0x5a8] sm:$0xff] }
  0x4e   :  { %1087 = vmatprep.subr.mxu1 %v148_v12  ;;  %1053 = vmatpush3.msra.mxu0 %v100_v14  ;;  %v168_v9 = vld [vmem:[#allocation3 + $0x428] sm:$0xff]  ;;  %v183_v12 = vld [vmem:[#allocation3 + $0x4a0] sm:$0xff] }
  0x4f   :  { %1088 = vmatpush3.msra.mxu1 %v132_v15  ;;  %1054 = vmatprep.subr.mxu0 %v115_v17  ;;  %v200_v11 = vld [vmem:[#allocation3 + $0x528] sm:$0xff]  ;;  %v215_v14 = vld [vmem:[#allocation3 + $0x5a0] sm:$0xff] }
  0x50   :  { %1089 = vmatprep.subr.mxu1 %v147_v18  ;;  %1055 = vmatpush3.msra.mxu0 %v99_v20  ;;  %v167_v15 = vld [vmem:[#allocation3 + $0x420] sm:$0xff]  ;;  %v182_v18 = vld [vmem:[#allocation3 + $0x498] sm:$0xff] }
  0x51   :  { %577 = vmatprep.mubr.f32.mxu0 %v316_v19  ;;  %1090 = vmatpush3.msra.mxu1 %v131_v22  ;;  %v199_v17 = vld [vmem:[#allocation3 + $0x520] sm:$0xff]  ;;  %v214_v19 = vld [vmem:[#allocation3 + $0x598] sm:$0xff]  ;;  %v181_v22 = vld [vmem:[#allocation3 + $0x490] sm:$0xff] }
  0x52   :  { %578 = vmatmul.mubr.f32.vlgmr.msra.gmra.mxu0 %v312_v21  ;;  %647 = vmatprep.mubr.f32.mxu1 %v324_v23  ;;  %v166_v20 = vld [vmem:[#allocation3 + $0x418] sm:$0xff]  ;;  %v213_v23 = vld [vmem:[#allocation3 + $0x590] sm:$0xff] }
  0x53   :  { %1094 = vmatprep.subr.mxu0 %v194_v24  ;;  %1129 = vmatprep.subr.mxu1 %v226_v26  ;;  %v198_v21 = vld [vmem:[#allocation3 + $0x518] sm:$0xff]  ;;  %v165_v24 = vld [vmem:[#allocation3 + $0x410] sm:$0xff]  ;;  %v1329_v26 = vld [vmem:[%s1361_s0 + $0x8] sm:$0xff] }
  0x54   :  { %648 = vmatmul.mubr.f32.vlgmr.msra.gmra.mxu1 %v320_v25  ;;  %1095 = vmatpush3.msra.mxu0 %v178_v27  ;;  %v197_v25 = vld [vmem:[#allocation3 + $0x510] sm:$0xff]  ;;  %v180_v27 = vld [vmem:[#allocation3 + $0x488] sm:$0xff] }
  0x55   :  { %1130 = vmatpush3.msra.mxu1 %v210_v28  ;;  %1096 = vmatprep.subr.mxu0 %v193_v29  ;;  %v212_v28 = vld [vmem:[#allocation3 + $0x588] sm:$0xff] }
  0x56   :  { %1131 = vmatprep.subr.mxu1 %v225_v30  ;;  %1097 = vmatpush3.msra.mxu0 %v177_v31  ;;  %v164_v29 = vld [vmem:[#allocation3 + $0x408] sm:$0xff]  ;;  %v179_v31 = vld [vmem:[#allocation3 + $0x480] sm:$0xff] }
  0x57   :  { %1132 = vmatpush3.msra.mxu1 %v209_v32  ;;  %1098 = vmatprep.subr.mxu0 %v192_v33  ;;  %v196_v30 = vld [vmem:[#allocation3 + $0x508] sm:$0xff]  ;;  %v211_v32 = vld [vmem:[#allocation3 + $0x580] sm:$0xff]  ;;  %v332_v33 = vrot.slane %v1329_v26, %v299_v56  ;;  %v336_v56 = vrot.slane %v1329_v26, %v303_v0 }
  0x58   :  { %1133 = vmatprep.subr.mxu1 %v224_v34  ;;  %1099 = vmatpush3.msra.mxu0 %v176_v59  ;;  %v163_v34 = vld [vmem:[#allocation3 + $0x400] sm:$0xff]  ;;  %v328_v59 = vrot.slane %v1329_v26, %v295_v63  ;;  %v242_v63 = vld [vmem:[#allocation3 + $0x678] sm:$0xff]  ;;  %v240_v0 = vld [vmem:[#allocation3 + $0x668] sm:$0xff] }
  0x59   :  { %1134 = vmatpush3.msra.mxu1 %v208_v35  ;;  %1100 = vmatprep.subr.mxu0 %v191_v36  ;;  %v195_v35 = vld [vmem:[#allocation3 + $0x500] sm:$0xff]  ;;  %v340_v36 = vrot.slane %v1329_v26, %v307_v60  ;;  %v241_v60 = vld [vmem:[#allocation3 + $0x670] sm:$0xff] }
  0x5a   :  { %1135 = vmatprep.subr.mxu1 %v223_v37  ;;  %1101 = vmatpush3.msra.mxu0 %v175_v38  ;;  %v258_v37 = vld [vmem:[#allocation3 + $0x6f8] sm:$0xff] }
  0x5b   :  { %1136 = vmatpush3.msra.mxu1 %v207_v39  ;;  %1102 = vmatprep.subr.mxu0 %v190_v40  ;;  %v290_v38 = vld [vmem:[#allocation3 + $0x7f8] sm:$0xff]  ;;  %v257_v40 = vld [vmem:[#allocation3 + $0x6f0] sm:$0xff] }
  0x5c   :  { %1137 = vmatprep.subr.mxu1 %v222_v41  ;;  %1103 = vmatpush3.msra.mxu0 %v174_v42  ;;  %v274_v39 = vld [vmem:[#allocation3 + $0x778] sm:$0xff]  ;;  %v289_v41 = vld [vmem:[#allocation3 + $0x7f0] sm:$0xff] }
  0x5d   :  { %1138 = vmatpush3.msra.mxu1 %v206_v43  ;;  %1104 = vmatprep.subr.mxu0 %v189_v44  ;;  %v273_v42 = vld [vmem:[#allocation3 + $0x770] sm:$0xff]  ;;  %v256_v43 = vld [vmem:[#allocation3 + $0x6e8] sm:$0xff] }
  0x5e   :  { %1139 = vmatprep.subr.mxu1 %v221_v45  ;;  %1105 = vmatpush3.msra.mxu0 %v173_v46  ;;  %v288_v44 = vld [vmem:[#allocation3 + $0x7e8] sm:$0xff]  ;;  %v255_v46 = vld [vmem:[#allocation3 + $0x6e0] sm:$0xff] }
  0x5f   :  { %1140 = vmatpush3.msra.mxu1 %v205_v48  ;;  %1106 = vmatprep.subr.mxu0 %v188_v49  ;;  %v272_v45 = vld [vmem:[#allocation3 + $0x768] sm:$0xff]  ;;  %v287_v48 = vld [vmem:[#allocation3 + $0x7e0] sm:$0xff] }
  0x60   :  { %1141 = vmatprep.subr.mxu1 %v220_v50  ;;  %1107 = vmatpush3.msra.mxu0 %v172_v51  ;;  %v239_v49 = vld [vmem:[#allocation3 + $0x660] sm:$0xff]  ;;  %v254_v51 = vld [vmem:[#allocation3 + $0x6d8] sm:$0xff] }
  0x61   :  { %1142 = vmatpush3.msra.mxu1 %v204_v52  ;;  %1108 = vmatprep.subr.mxu0 %v187_v53  ;;  %v271_v50 = vld [vmem:[#allocation3 + $0x760] sm:$0xff]  ;;  %v286_v52 = vld [vmem:[#allocation3 + $0x7d8] sm:$0xff] }
  0x62   :  { %1143 = vmatprep.subr.mxu1 %v219_v54  ;;  %1109 = vmatpush3.msra.mxu0 %v171_v55  ;;  %v238_v53 = vld [vmem:[#allocation3 + $0x658] sm:$0xff]  ;;  %v253_v55 = vld [vmem:[#allocation3 + $0x6d0] sm:$0xff] }
  0x63   :  { %1144 = vmatpush3.msra.mxu1 %v203_v57  ;;  %1110 = vmatprep.subr.mxu0 %v186_v58  ;;  %v270_v54 = vld [vmem:[#allocation3 + $0x758] sm:$0xff]  ;;  %v285_v57 = vld [vmem:[#allocation3 + $0x7d0] sm:$0xff] }
  0x64   :  { %1145 = vmatprep.subr.mxu1 %v218_v61  ;;  %1111 = vmatpush3.msra.mxu0 %v170_v62  ;;  %v237_v58 = vld [vmem:[#allocation3 + $0x650] sm:$0xff]  ;;  %v252_v62 = vld [vmem:[#allocation3 + $0x6c8] sm:$0xff] }
  0x65   :  { %1146 = vmatpush3.msra.mxu1 %v202_v1  ;;  %1112 = vmatprep.subr.mxu0 %v185_v2  ;;  %v269_v61 = vld [vmem:[#allocation3 + $0x750] sm:$0xff]  ;;  %v284_v1 = vld [vmem:[#allocation3 + $0x7c8] sm:$0xff] }
  0x66   :  { %1147 = vmatprep.subr.mxu1 %v217_v3  ;;  %1113 = vmatpush3.msra.mxu0 %v169_v4  ;;  %v236_v2 = vld [vmem:[#allocation3 + $0x648] sm:$0xff]  ;;  %v251_v4 = vld [vmem:[#allocation3 + $0x6c0] sm:$0xff] }
  0x67   :  { %1148 = vmatpush3.msra.mxu1 %v201_v5  ;;  %1114 = vmatprep.subr.mxu0 %v184_v6  ;;  %v268_v3 = vld [vmem:[#allocation3 + $0x748] sm:$0xff]  ;;  %v283_v5 = vld [vmem:[#allocation3 + $0x7c0] sm:$0xff] }
  0x68   :  { %1149 = vmatprep.subr.mxu1 %v216_v8  ;;  %1115 = vmatpush3.msra.mxu0 %v168_v9  ;;  %v235_v6 = vld [vmem:[#allocation3 + $0x640] sm:$0xff]  ;;  %v250_v9 = vld [vmem:[#allocation3 + $0x6b8] sm:$0xff] }
  0x69   :  { %1150 = vmatpush3.msra.mxu1 %v200_v11  ;;  %1116 = vmatprep.subr.mxu0 %v183_v12  ;;  %v267_v8 = vld [vmem:[#allocation3 + $0x740] sm:$0xff]  ;;  %v282_v11 = vld [vmem:[#allocation3 + $0x7b8] sm:$0xff] }
  0x6a   :  { %1151 = vmatprep.subr.mxu1 %v215_v14  ;;  %1117 = vmatpush3.msra.mxu0 %v167_v15  ;;  %v234_v12 = vld [vmem:[#allocation3 + $0x638] sm:$0xff]  ;;  %v249_v15 = vld [vmem:[#allocation3 + $0x6b0] sm:$0xff] }
  0x6b   :  { %1152 = vmatpush3.msra.mxu1 %v199_v17  ;;  %1118 = vmatprep.subr.mxu0 %v182_v18  ;;  %v266_v14 = vld [vmem:[#allocation3 + $0x738] sm:$0xff]  ;;  %v281_v17 = vld [vmem:[#allocation3 + $0x7b0] sm:$0xff] }
  0x6c   :  { %1153 = vmatprep.subr.mxu1 %v214_v19  ;;  %1119 = vmatpush3.msra.mxu0 %v166_v20  ;;  %v233_v18 = vld [vmem:[#allocation3 + $0x630] sm:$0xff]  ;;  %v248_v20 = vld [vmem:[#allocation3 + $0x6a8] sm:$0xff] }
  0x6d   :  { %1154 = vmatpush3.msra.mxu1 %v198_v21  ;;  %1120 = vmatprep.subr.mxu0 %v181_v22  ;;  %v265_v19 = vld [vmem:[#allocation3 + $0x730] sm:$0xff]  ;;  %v280_v21 = vld [vmem:[#allocation3 + $0x7a8] sm:$0xff] }
  0x6e   :  { %1155 = vmatprep.subr.mxu1 %v213_v23  ;;  %1121 = vmatpush3.msra.mxu0 %v165_v24  ;;  %v232_v22 = vld [vmem:[#allocation3 + $0x628] sm:$0xff]  ;;  %v247_v24 = vld [vmem:[#allocation3 + $0x6a0] sm:$0xff] }
  0x6f   :  { %1156 = vmatpush3.msra.mxu1 %v197_v25  ;;  %1122 = vmatprep.subr.mxu0 %v180_v27  ;;  %v264_v23 = vld [vmem:[#allocation3 + $0x728] sm:$0xff]  ;;  %v279_v25 = vld [vmem:[#allocation3 + $0x7a0] sm:$0xff] }
  0x70   :  { %1157 = vmatprep.subr.mxu1 %v212_v28  ;;  %1123 = vmatpush3.msra.mxu0 %v164_v29  ;;  %v231_v27 = vld [vmem:[#allocation3 + $0x620] sm:$0xff]  ;;  %v246_v29 = vld [vmem:[#allocation3 + $0x698] sm:$0xff] }
  0x71   :  { %1158 = vmatpush3.msra.mxu1 %v196_v30  ;;  %1124 = vmatprep.subr.mxu0 %v179_v31  ;;  %v263_v28 = vld [vmem:[#allocation3 + $0x720] sm:$0xff]  ;;  %v278_v30 = vld [vmem:[#allocation3 + $0x798] sm:$0xff] }
  0x72   :  { %1159 = vmatprep.subr.mxu1 %v211_v32  ;;  %1125 = vmatpush3.msra.mxu0 %v163_v34  ;;  %v230_v31 = vld [vmem:[#allocation3 + $0x618] sm:$0xff]  ;;  %v277_v34 = vld [vmem:[#allocation3 + $0x790] sm:$0xff] }
  0x73   :  { %717 = vmatprep.mubr.f32.mxu0 %v332_v33  ;;  %1160 = vmatpush3.msra.mxu1 %v195_v35  ;;  %v262_v32 = vld [vmem:[#allocation3 + $0x718] sm:$0xff]  ;;  %v245_v33 = vld [vmem:[#allocation3 + $0x690] sm:$0xff] }
  0x74   :  { %718 = vmatmul.mubr.f32.vlgmr.msra.gmra.mxu0 %v328_v59  ;;  %787 = vmatprep.mubr.f32.mxu1 %v340_v36  ;;  %v229_v59 = vld [vmem:[#allocation3 + $0x610] sm:$0xff]  ;;  %v244_v36 = vld [vmem:[#allocation3 + $0x688] sm:$0xff] }
  0x75   :  { %1164 = vmatprep.subr.mxu0 %v258_v37  ;;  %1199 = vmatprep.subr.mxu1 %v290_v38  ;;  %v261_v35 = vld [vmem:[#allocation3 + $0x710] sm:$0xff]  ;;  %v276_v37 = vld [vmem:[#allocation3 + $0x788] sm:$0xff] }
  0x76   :  { %788 = vmatmul.mubr.f32.vlgmr.msra.gmra.mxu1 %v336_v56  ;;  %1165 = vmatpush3.msra.mxu0 %v242_v63  ;;  %v228_v56 = vld [vmem:[#allocation3 + $0x608] sm:$0xff]  ;;  %v243_v63 = vld [vmem:[#allocation3 + $0x680] sm:$0xff] }
  0x77   :  { %1200 = vmatpush3.msra.mxu1 %v274_v39  ;;  %1166 = vmatprep.subr.mxu0 %v257_v40  ;;  %v260_v38 = vld [vmem:[#allocation3 + $0x708] sm:$0xff]  ;;  %v275_v39 = vld [vmem:[#allocation3 + $0x780] sm:$0xff]  ;;  %v348_v40 = vrot.slane %v1329_v26, %v315_v7  ;;  %v1263_v7 = vmov 0.0  }
  0x78   :  { %1201 = vmatprep.subr.mxu1 %v289_v41  ;;  %1167 = vmatpush3.msra.mxu0 %v241_v60  ;;  %v227_v41 = vld [vmem:[#allocation3 + $0x600] sm:$0xff]  ;;  %v356_v60 = vrot.slane %v1329_v26, %v323_v13  ;;  %31 = vst [vmem:[#allocation2] sm:$0x1] %v1263_v7 }
  0x79   :  { %1202 = vmatpush3.msra.mxu1 %v273_v42  ;;  %1168 = vmatprep.subr.mxu0 %v256_v43  ;;  %v259_v42 = vld [vmem:[#allocation3 + $0x700] sm:$0xff]  ;;  %v344_v43 = vrot.slane %v1329_v26, %v311_v10 }
  0x7a   :  { %1203 = vmatprep.subr.mxu1 %v288_v44  ;;  %1169 = vmatpush3.msra.mxu0 %v240_v0  ;;  %v352_v44 = vrot.slane %v1329_v26, %v319_v16 }
  0x7b   :  { %1204 = vmatpush3.msra.mxu1 %v272_v45  ;;  %1170 = vmatprep.subr.mxu0 %v255_v46 }
  0x7c   :  { %1205 = vmatprep.subr.mxu1 %v287_v48  ;;  %1171 = vmatpush3.msra.mxu0 %v239_v49 }
  0x7d   :  { %1206 = vmatpush3.msra.mxu1 %v271_v50  ;;  %1172 = vmatprep.subr.mxu0 %v254_v51 }
  0x7e   :  { %1207 = vmatprep.subr.mxu1 %v286_v52  ;;  %1173 = vmatpush3.msra.mxu0 %v238_v53 }
  0x7f   :  { %1208 = vmatpush3.msra.mxu1 %v270_v54  ;;  %1174 = vmatprep.subr.mxu0 %v253_v55 }
  0x80   :  { %1209 = vmatprep.subr.mxu1 %v285_v57  ;;  %1175 = vmatpush3.msra.mxu0 %v237_v58 }
  0x81   :  { %1210 = vmatpush3.msra.mxu1 %v269_v61  ;;  %1176 = vmatprep.subr.mxu0 %v252_v62 }
  0x82   :  { %1211 = vmatprep.subr.mxu1 %v284_v1  ;;  %1177 = vmatpush3.msra.mxu0 %v236_v2 }
  0x83   :  { %1212 = vmatpush3.msra.mxu1 %v268_v3  ;;  %1178 = vmatprep.subr.mxu0 %v251_v4 }
  0x84   :  { %1213 = vmatprep.subr.mxu1 %v283_v5  ;;  %1179 = vmatpush3.msra.mxu0 %v235_v6 }
  0x85   :  { %1214 = vmatpush3.msra.mxu1 %v267_v8  ;;  %1180 = vmatprep.subr.mxu0 %v250_v9 }
  0x86   :  { %1215 = vmatprep.subr.mxu1 %v282_v11  ;;  %1181 = vmatpush3.msra.mxu0 %v234_v12 }
  0x87   :  { %1216 = vmatpush3.msra.mxu1 %v266_v14  ;;  %1182 = vmatprep.subr.mxu0 %v249_v15  ;;  %v32_v14 = vld [vmem:[#allocation2] sm:$0x1] }
  0x88   :  { %1217 = vmatprep.subr.mxu1 %v281_v17  ;;  %1183 = vmatpush3.msra.mxu0 %v233_v18 }
  0x89   :  { %1218 = vmatpush3.msra.mxu1 %v265_v19  ;;  %1184 = vmatprep.subr.mxu0 %v248_v20 }
  0x8a   :  { %1219 = vmatprep.subr.mxu1 %v280_v21  ;;  %1185 = vmatpush3.msra.mxu0 %v232_v22 }
  0x8b   :  { %1220 = vmatpush3.msra.mxu1 %v264_v23  ;;  %1186 = vmatprep.subr.mxu0 %v247_v24 }
  0x8c   :  { %1221 = vmatprep.subr.mxu1 %v279_v25  ;;  %1187 = vmatpush3.msra.mxu0 %v231_v27 }
  0x8d   :  { %1222 = vmatpush3.msra.mxu1 %v263_v28  ;;  %1188 = vmatprep.subr.mxu0 %v246_v29 }
  0x8e   :  { %1223 = vmatprep.subr.mxu1 %v278_v30  ;;  %1189 = vmatpush3.msra.mxu0 %v230_v31 }
  0x8f   :  { %1224 = vmatpush3.msra.mxu1 %v262_v32  ;;  %1190 = vmatprep.subr.mxu0 %v245_v33 }
  0x90   :  { %1225 = vmatprep.subr.mxu1 %v277_v34  ;;  %1191 = vmatpush3.msra.mxu0 %v229_v59 }
  0x91   :  { %1226 = vmatpush3.msra.mxu1 %v261_v35  ;;  %1192 = vmatprep.subr.mxu0 %v244_v36 }
  0x92   :  { %1227 = vmatprep.subr.mxu1 %v276_v37  ;;  %1193 = vmatpush3.msra.mxu0 %v228_v56 }
  0x93   :  { %1228 = vmatpush3.msra.mxu1 %v260_v38  ;;  %1194 = vmatprep.subr.mxu0 %v243_v63 }
  0x94   :  { %1229 = vmatprep.subr.mxu1 %v275_v39  ;;  %1195 = vmatpush3.msra.mxu0 %v227_v41 }
  0x95   :  { %857 = vmatprep.mubr.f32.mxu0 %v348_v40  ;;  %1230 = vmatpush3.msra.mxu1 %v259_v42 }
  0x96   :  { %927 = vmatprep.mubr.f32.mxu1 %v356_v60  ;;  %858 = vmatmul.mubr.f32.vlgmr.msra.gmra.mxu0 %v344_v43 }
  0x97   :  { %928 = vmatmul.mubr.f32.vlgmr.msra.gmra.mxu1 %v352_v44 }
  0xf0   :  { %v986_v13 = vpop.f32.mrf.mxu0 }
  0xf1   :  { %v1021_v0 = vpop.f32.mrf.mxu1 }
  0xf2   :  { %v987_v45 = vpop.f32.mrf.mxu0 }
  0xf3   :  { %v1022_v48 = vpop.f32.mrf.mxu1  ;;  %v988_v47 = vadd.f32 %v987_v45, %v986_v13 }
  0xf4   :  { %v1023_v50 = vadd.f32 %v1022_v48, %v1021_v0 }
  0xf6   :  { %v510_v52 = vadd.f32 %v1023_v50, %v988_v47 }
 0x112   :  { %v1056_v46 = vpop.f32.mrf.mxu0 }
 0x114   :  { %v1091_v10 = vpop.f32.mrf.mxu1  ;;  %v1057_v49 = vpop.f32.mrf.mxu0 }
 0x115   :  { %v1058_v26 = vadd.f32 %v1057_v49, %v1056_v46 }
 0x116   :  { %v1092_v51 = vpop.f32.mrf.mxu1 }
 0x117   :  { %v580_v55 = vadd.f32 %v1058_v26, %v510_v52  ;;  %v1093_v57 = vadd.f32 %v1092_v51, %v1091_v10 }
 0x119   :  { %v650_v62 = vadd.f32 %v1093_v57, %v580_v55 }
 0x134   :  { %v1126_v16 = vpop.f32.mrf.mxu0 }
 0x136   :  { %v1161_v53 = vpop.f32.mrf.mxu1  ;;  %v1127_v54 = vpop.f32.mrf.mxu0 }
 0x137   :  { %v1128_v58 = vadd.f32 %v1127_v54, %v1126_v16 }
 0x138   :  { %v1162_v61 = vpop.f32.mrf.mxu1 }
 0x139   :  { %v720_v1 = vadd.f32 %v1128_v58, %v650_v62  ;;  %v1163_v2 = vadd.f32 %v1162_v61, %v1161_v53 }
 0x13b   :  { %v790_v8 = vadd.f32 %v1163_v2, %v720_v1 }
 0x156   :  { %v1196_v3 = vpop.f32.mrf.mxu0 }
 0x157   :  { %v1231_v4 = vpop.f32.mrf.mxu1 }
 0x158   :  { %v1197_v5 = vpop.f32.mrf.mxu0 }
 0x159   :  { %v1232_v6 = vpop.f32.mrf.mxu1  ;;  %v1198_v9 = vadd.f32 %v1197_v5, %v1196_v3 }
 0x15a   :  { %v1233_v12 = vadd.f32 %v1232_v6, %v1231_v4 }
 0x15b   :  { %v860_v11 = vadd.f32 %v1198_v9, %v790_v8 }
 0x15d   :  { %v930_v15 = vadd.f32 %v1233_v12, %v860_v11 }
 0x15f   :  { %v933_v17 = vadd.f32 %v930_v15, %v32_v14 }
 0x161   :  { %934 = vst [vmem:[#allocation2] sm:$0x1] %v933_v17 }
 0x168   :  { %v938_v18 = vld [vmem:[#allocation2] sm:$0x1] }
 0x169   :  { %vm939_vm0 = vcmp.gt.f32.partialorder %v938_v18, 0.5  ;;  %v942_v19 = vmul.f32 0.2, %v938_v18 }
 0x16a   :  { %v940_v20 = vsel %vm939_vm0, 1.0, %v1263_v7 }
 0x16b   :  { %941 = vst [vmem:[%s1363_s2] sm:$0x1] %v940_v20  ;;  %v943_v21 = vsel %vm939_vm0, 0.0, %v942_v19 }
 0x16c   :  { %944 = vst [vmem:[%s1364_s3] sm:$0x1] %v943_v21 }
 0x16d   :  { %953 = vsyncpa [#allocation4], 1 }

</bundles_post_ra>
